<compile_context>
chip_gen: v5e
topology: v5e:2x2
jax: 0.10.0
libtpu: 0.0.40
codegen_flags: <defaults>
</compile_context>

<pallas_src>
import jax
import jax.numpy as jnp
from jax.experimental import pallas as pl
from jax.experimental.pallas import tpu as pltpu

# ---- problem sizes (small, consistent with a latent-diffusion forward) ----
B = 2          # batch
C = 4          # latent channels
HS = 16        # spatial H
WS = 16        # spatial W
HW = HS * WS   # 256 (lane multiple)
COND_DIM = 8   # conditioning embedding dim
HID = 32       # inner-model hidden width

# ---- packed weight-slab layout (rows x 128 lanes, f32) --------------------
#   rows [0, COND_DIM)            : cond_t           in cols [0, 2B)
#   rows [COND_DIM, COND_DIM+HID) : W1^T | b1 | Wc^T  in cols [0,C) [C,C+1) [C+1,C+1+COND_DIM)
#   rows [COND_DIM+HID, +C)       : W2^T | b2         in cols [0,HID) [HID,HID+1)
_ROW_COND = 0
_ROW_H = COND_DIM
_ROW_OUT = COND_DIM + HID
_SLAB_ROWS = ((COND_DIM + HID + C + 7) // 8) * 8      # 48
_SLAB_COLS = 128


# ----------------------------- Pallas kernel ------------------------------
def _cfg_kernel(scal_ref,            # SMEM: (B+1,) = [sigma_0..sigma_{B-1}, cond_scale]
                x_ref,               # VMEM: (B*C, HW)  dense slab
                slab_ref,            # VMEM: (_SLAB_ROWS, 128) packed weights
                out_ref):            # VMEM: (B*C, HW)  dense slab
    cscale = scal_ref[B]

    # Three dense full-lane row-block loads; operands are static array slices.
    blk_cond = slab_ref[_ROW_COND:_ROW_COND + COND_DIM, :]       # (COND_DIM, 128)
    blk_h = slab_ref[_ROW_H:_ROW_H + HID, :]                     # (HID, 128)
    blk_out = slab_ref[_ROW_OUT:_SLAB_ROWS, :]                   # (8, 128)

    cond_t = blk_cond[:, 0:2 * B]                                # (COND_DIM, 2B)
    w1t = blk_h[:, 0:C]                                          # (HID, C)
    b1t = blk_h[:, C:C + 1]                                      # (HID, 1)
    wct = blk_h[:, C + 1:C + 1 + COND_DIM]                       # (HID, COND_DIM)
    w2t = blk_out[0:C, 0:HID]                                    # (C, HID)
    b2t = blk_out[0:C, HID:HID + 1]                              # (C, 1)

    # All 2B embedding biases in one tiny dot; fold b1 once.
    # columns [0..B-1] = uncond branch, [B..2B-1] = cond branch.
    bias_all = jnp.dot(wct, cond_t,
                       preferred_element_type=jnp.float32) + b1t  # (HID, 2B)

    # per-batch c_in = rsqrt(sigma^2 + 1) as a (1, B*HW) lane vector (EUP).
    cin_cols = []
    for b in range(B):
        s = scal_ref[b]
        cin_cols.append(jax.lax.rsqrt(
            jnp.full((1, HW), s * s + 1.0, dtype=jnp.float32)))
    c_in = jnp.concatenate(cin_cols, axis=1)                      # (1, B*HW)

    # Both batch elements side-by-side on the lane axis: (C, B*HW) = (4, 512).
    x_full = x_ref[...]                                           # one dense load
    x_all = jnp.concatenate(
        [x_full[b * C:(b + 1) * C, :] for b in range(B)], axis=1)  # (C, B*HW)
    xs = x_all * c_in

    # x-dependent pre-activation shared by both CFG branches: one MXU pass.
    pre = jnp.dot(w1t, xs, preferred_element_type=jnp.float32)     # (HID, B*HW)

    # Hoisted bias lane-broadcasts: exactly 2 splats per branch.
    bias_u = jnp.concatenate(
        [jnp.broadcast_to(bias_all[:, b:b + 1], (HID, HW)) for b in range(B)],
        axis=1)                                                     # (HID, B*HW)
    bias_c = jnp.concatenate(
        [jnp.broadcast_to(bias_all[:, B + b:B + b + 1], (HID, HW)) for b in range(B)],
        axis=1)                                                     # (HID, B*HW)

    h_u = jax.nn.gelu(pre + bias_u, approximate=True)               # (HID, B*HW)
    h_c = jax.nn.gelu(pre + bias_c, approximate=True)               # (HID, B*HW)

    # CFG mix is linear in h -> push it through the affine output head:
    #   W2^T @ (h_u + s*(h_c - h_u)) + b2  ==  out_u + s*(out_c - out_u)
    h_mix = h_u + (h_c - h_u) * cscale
    out_all = jnp.dot(w2t, h_mix,
                      preferred_element_type=jnp.float32) + b2t     # (C, B*HW)

    # Back to the (B*C, HW) slab layout; single dense, unmasked full-slab store.
    out_ref[...] = jnp.concatenate(
        [out_all[:, b * HW:(b + 1) * HW] for b in range(B)], axis=0)


# ------------------------------- wrapper ----------------------------------
def cfg_denoiser(x_nchw, sigma, uncond, cond, cond_scale, params):
    """x_nchw: (B,C,H,W) f32; sigma: (B,) f32; uncond/cond: (B,COND_DIM) f32;
    cond_scale: python float.  Returns (B,C,H,W) f32."""
    w1, b1, wc, w2, b2 = params
    Bx, Cx, Hx, Wx = x_nchw.shape
    hw = Hx * Wx
    assert (Bx, Cx, hw) == (B, C, HW) and hw % 128 == 0, "kernel is shape-specialized"

    # channels-first flattened dense slab: NCHW -> (B*C, HW) is a free reshape.
    x = x_nchw.reshape(Bx * Cx, hw).astype(jnp.float32)

    # [uncond; cond] stacked and transposed once (tiny (2B,COND_DIM) array).
    cond_t = jnp.concatenate([uncond, cond], axis=0).T.astype(jnp.float32)  # (COND_DIM, 2B)

    # One packed, pre-padded weight slab (in production: built once per prompt,
    # reused across all sampler steps — one DMA descriptor instead of seven).
    slab = jnp.zeros((_SLAB_ROWS, _SLAB_COLS), jnp.float32)
    slab = slab.at[_ROW_COND:_ROW_COND + COND_DIM, 0:2 * Bx].set(cond_t)
    slab = slab.at[_ROW_H:_ROW_H + HID, 0:Cx].set(w1.T.astype(jnp.float32))
    slab = slab.at[_ROW_H:_ROW_H + HID, Cx:Cx + 1].set(
        b1.reshape(-1, 1).astype(jnp.float32))
    slab = slab.at[_ROW_H:_ROW_H + HID, Cx + 1:Cx + 1 + COND_DIM].set(
        wc.T.astype(jnp.float32))
    slab = slab.at[_ROW_OUT:_ROW_OUT + Cx, 0:HID].set(w2.T.astype(jnp.float32))
    slab = slab.at[_ROW_OUT:_ROW_OUT + Cx, HID:HID + 1].set(
        b2.reshape(-1, 1).astype(jnp.float32))

    # sigma and cond_scale merged into one SMEM scalar array.
    scal = jnp.concatenate([sigma.astype(jnp.float32),
                            jnp.asarray([cond_scale], dtype=jnp.float32)])   # (B+1,)

    vmem = pl.BlockSpec(memory_space=pltpu.MemorySpace.VMEM)
    smem = pl.BlockSpec(memory_space=pltpu.MemorySpace.SMEM)

    cost = pl.CostEstimate(
        flops=4 * HID * Cx * Bx * hw + 2 * HID * COND_DIM * 2 * Bx + 20 * HID * Bx * hw,
        transcendentals=2 * HID * Bx * hw + Bx * hw,
        bytes_accessed=2 * Bx * Cx * hw * 4 + _SLAB_ROWS * _SLAB_COLS * 4 + 4 * (Bx + 1),
    )

    out = pl.pallas_call(
        _cfg_kernel,
        out_shape=jax.ShapeDtypeStruct((Bx * Cx, hw), jnp.float32),
        # single invocation (no grid): workload is tiny and overhead-bound;
        # per-grid-step pipeline overhead (~0.35us) would dominate.
        in_specs=[
            smem,   # scalars (B+1,)  = [sigma..., cond_scale]
            vmem,   # x slab (B*C, HW)        -- lane axis = HW (lane-dense)
            vmem,   # packed weight slab (48, 128)
        ],
        out_specs=vmem,
        cost_estimate=cost,
    )(scal, x, slab)

    return out.reshape(Bx, Cx, Hx, Wx)


# ------------------------- pure-JAX reference ------------------------------
def _inner_model_ref(x_nchw, sigma, cond, params):
    # Literal canonical-layout inner model: x (N,C,H,W), cond (N,COND_DIM).
    w1, b1, wc, w2, b2 = params
    N, Cc, Hh, Ww = x_nchw.shape
    c_in = 1.0 / jnp.sqrt(sigma * sigma + 1.0)
    xf = (x_nchw * c_in[:, None, None, None]).reshape(N, Cc, Hh * Ww)
    xf = jnp.transpose(xf, (0, 2, 1))                      # (N, HW, C)
    emb = cond @ wc                                        # (N, HID)
    h = jax.nn.gelu(xf @ w1 + b1 + emb[:, None, :], approximate=True)
    out = h @ w2 + b2                                      # (N, HW, C)
    return jnp.transpose(out, (0, 2, 1)).reshape(N, Cc, Hh, Ww)


def cfg_denoiser_ref(x_nchw, sigma, uncond, cond, cond_scale, params):
    """Literal CFGDenoiser.forward semantics: cat -> inner model -> chunk -> mix."""
    x_in = jnp.concatenate([x_nchw] * 2)
    sigma_in = jnp.concatenate([sigma] * 2)
    cond_in = jnp.concatenate([uncond, cond])
    out = _inner_model_ref(x_in, sigma_in, cond_in, params)
    u, c = jnp.split(out, 2)
    return u + (c - u) * cond_scale


# --------------------------------- main ------------------------------------
if __name__ == "__main__":
    key = jax.random.PRNGKey(0)
    kx, ks, ku, kc, k1, k2, k3 = jax.random.split(key, 7)

    # deterministic synthetic inner-model parameters (canonical orientation)
    w1 = jax.random.normal(k1, (C, HID), jnp.float32) * 0.2
    b1 = jnp.arange(HID, dtype=jnp.float32).reshape(1, HID) * 0.01
    wc = jax.random.normal(k2, (COND_DIM, HID), jnp.float32) * 0.2
    w2 = jax.random.normal(k3, (HID, C), jnp.float32) * 0.2
    b2 = jnp.arange(C, dtype=jnp.float32).reshape(1, C) * 0.05
    params = (w1, b1, wc, w2, b2)

    # deterministic inputs
    x = jax.random.normal(kx, (B, C, HS, WS), jnp.float32)
    sigma = jnp.abs(jax.random.normal(ks, (B,), jnp.float32)) + 0.5
    uncond = jax.random.normal(ku, (B, COND_DIM), jnp.float32)
    cond = jax.random.normal(kc, (B, COND_DIM), jnp.float32)
    cond_scale = 7.5

    out = cfg_denoiser(x, sigma, uncond, cond, cond_scale, params)
    out = jax.block_until_ready(out)

    ref = cfg_denoiser_ref(x, sigma, uncond, cond, cond_scale, params)
    assert out.shape == (B, C, HS, WS)
    assert jnp.allclose(out, ref, atol=1e-3, rtol=1e-3), "mismatch vs reference"

    print("KERNEL_OK")
</pallas_src>

<mosaic_0001>
module attributes {stable_mosaic.version = 11 : i64} {
  func.func @_cfg_kernel(%arg0: memref<3xf32, #tpu.memory_space<smem>>, %arg1: memref<8x256xf32, #tpu.memory_space<vmem>>, %arg2: memref<48x128xf32, #tpu.memory_space<vmem>>, %arg3: memref<8x256xf32, #tpu.memory_space<vmem>>) attributes {dimension_semantics = [], scalar_prefetch = 0 : i64, scratch_operands = 0 : i64, tpu.core_type = #tpu.core_type<tc>} {
    %c2 = arith.constant 2 : index
    %0 = memref.load %arg0[%c2] : memref<3xf32, #tpu.memory_space<smem>>
    %c0 = arith.constant 0 : index
    %c0_0 = arith.constant 0 : index
    %1 = vector.load %arg2[%c0, %c0_0] : memref<48x128xf32, #tpu.memory_space<vmem>>, vector<8x128xf32>
    %c8 = arith.constant 8 : index
    %c0_1 = arith.constant 0 : index
    %2 = vector.load %arg2[%c8, %c0_1] : memref<48x128xf32, #tpu.memory_space<vmem>>, vector<32x128xf32>
    %c40 = arith.constant 40 : index
    %c0_2 = arith.constant 0 : index
    %3 = vector.load %arg2[%c40, %c0_2] : memref<48x128xf32, #tpu.memory_space<vmem>>, vector<8x128xf32>
    %4 = vector.extract_strided_slice %1 {offsets = [0, 0], sizes = [8, 4], strides = [1, 1]} : vector<8x128xf32> to vector<8x4xf32>
    %5 = vector.extract_strided_slice %2 {offsets = [0, 0], sizes = [32, 4], strides = [1, 1]} : vector<32x128xf32> to vector<32x4xf32>
    %6 = vector.extract_strided_slice %2 {offsets = [0, 4], sizes = [32, 1], strides = [1, 1]} : vector<32x128xf32> to vector<32x1xf32>
    %7 = vector.extract_strided_slice %2 {offsets = [0, 5], sizes = [32, 8], strides = [1, 1]} : vector<32x128xf32> to vector<32x8xf32>
    %8 = vector.extract_strided_slice %3 {offsets = [0, 0], sizes = [4, 32], strides = [1, 1]} : vector<8x128xf32> to vector<4x32xf32>
    %9 = vector.extract_strided_slice %3 {offsets = [0, 32], sizes = [4, 1], strides = [1, 1]} : vector<8x128xf32> to vector<4x1xf32>
    %cst = arith.constant dense<0.000000e+00> : vector<32x4xf32>
    %10 = tpu.matmul %7, %4, %cst {dimension_numbers = #tpu.dot_dimension_numbers<[1], [0], [0], [1], [0, 0, 1, 1], [], []>} : vector<32x8xf32>, vector<8x4xf32>, vector<32x4xf32> -> vector<32x4xf32>
    %11 = vector.broadcast %6 : vector<32x1xf32> to vector<32x4xf32>
    %12 = arith.addf %10, %11 : vector<32x4xf32>
    %c0_3 = arith.constant 0 : index
    %13 = memref.load %arg0[%c0_3] : memref<3xf32, #tpu.memory_space<smem>>
    %14 = arith.mulf %13, %13 : f32
    %cst_4 = arith.constant 1.000000e+00 : f32
    %15 = arith.addf %14, %cst_4 : f32
    %16 = vector.broadcast %15 : f32 to vector<1x256xf32>
    %17 = math.rsqrt %16 : vector<1x256xf32>
    %c1 = arith.constant 1 : index
    %18 = memref.load %arg0[%c1] : memref<3xf32, #tpu.memory_space<smem>>
    %19 = arith.mulf %18, %18 : f32
    %cst_5 = arith.constant 1.000000e+00 : f32
    %20 = arith.addf %19, %cst_5 : f32
    %21 = vector.broadcast %20 : f32 to vector<1x256xf32>
    %22 = math.rsqrt %21 : vector<1x256xf32>
    %23 = tpu.concatenate %17, %22 in 1 : vector<1x256xf32>, vector<1x256xf32> -> vector<1x512xf32>
    %c0_6 = arith.constant 0 : index
    %c0_7 = arith.constant 0 : index
    %24 = vector.load %arg1[%c0_6, %c0_7] : memref<8x256xf32, #tpu.memory_space<vmem>>, vector<8x256xf32>
    %25 = vector.extract_strided_slice %24 {offsets = [0, 0], sizes = [4, 256], strides = [1, 1]} : vector<8x256xf32> to vector<4x256xf32>
    %26 = vector.extract_strided_slice %24 {offsets = [4, 0], sizes = [4, 256], strides = [1, 1]} : vector<8x256xf32> to vector<4x256xf32>
    %27 = tpu.concatenate %25, %26 in 1 : vector<4x256xf32>, vector<4x256xf32> -> vector<4x512xf32>
    %28 = vector.broadcast %23 : vector<1x512xf32> to vector<4x512xf32>
    %29 = arith.mulf %27, %28 : vector<4x512xf32>
    %cst_8 = arith.constant dense<0.000000e+00> : vector<32x512xf32>
    %30 = tpu.matmul %5, %29, %cst_8 {dimension_numbers = #tpu.dot_dimension_numbers<[1], [0], [0], [1], [0, 0, 1, 1], [], []>} : vector<32x4xf32>, vector<4x512xf32>, vector<32x512xf32> -> vector<32x512xf32>
    %31 = vector.extract_strided_slice %12 {offsets = [0, 0], sizes = [32, 1], strides = [1, 1]} : vector<32x4xf32> to vector<32x1xf32>
    %32 = vector.shape_cast %31 : vector<32x1xf32> to vector<32x1xf32>
    %33 = vector.broadcast %32 : vector<32x1xf32> to vector<32x256xf32>
    %34 = vector.extract_strided_slice %12 {offsets = [0, 1], sizes = [32, 1], strides = [1, 1]} : vector<32x4xf32> to vector<32x1xf32>
    %35 = vector.shape_cast %34 : vector<32x1xf32> to vector<32x1xf32>
    %36 = vector.broadcast %35 : vector<32x1xf32> to vector<32x256xf32>
    %37 = tpu.concatenate %33, %36 in 1 : vector<32x256xf32>, vector<32x256xf32> -> vector<32x512xf32>
    %38 = vector.extract_strided_slice %12 {offsets = [0, 2], sizes = [32, 1], strides = [1, 1]} : vector<32x4xf32> to vector<32x1xf32>
    %39 = vector.shape_cast %38 : vector<32x1xf32> to vector<32x1xf32>
    %40 = vector.broadcast %39 : vector<32x1xf32> to vector<32x256xf32>
    %41 = vector.extract_strided_slice %12 {offsets = [0, 3], sizes = [32, 1], strides = [1, 1]} : vector<32x4xf32> to vector<32x1xf32>
    %42 = vector.shape_cast %41 : vector<32x1xf32> to vector<32x1xf32>
    %43 = vector.broadcast %42 : vector<32x1xf32> to vector<32x256xf32>
    %44 = tpu.concatenate %40, %43 in 1 : vector<32x256xf32>, vector<32x256xf32> -> vector<32x512xf32>
    %45 = arith.addf %30, %37 : vector<32x512xf32>
    %46 = arith.mulf %45, %45 : vector<32x512xf32>
    %47 = arith.mulf %45, %46 : vector<32x512xf32>
    %cst_9 = arith.constant 4.471500e-02 : f32
    %48 = vector.broadcast %cst_9 : f32 to vector<32x512xf32>
    %49 = arith.mulf %48, %47 : vector<32x512xf32>
    %50 = arith.addf %45, %49 : vector<32x512xf32>
    %cst_10 = arith.constant 0.797884583 : f32
    %51 = vector.broadcast %cst_10 : f32 to vector<32x512xf32>
    %52 = arith.mulf %51, %50 : vector<32x512xf32>
    %53 = math.tanh %52 : vector<32x512xf32>
    %cst_11 = arith.constant 1.000000e+00 : f32
    %54 = vector.broadcast %cst_11 : f32 to vector<32x512xf32>
    %55 = arith.addf %54, %53 : vector<32x512xf32>
    %cst_12 = arith.constant 5.000000e-01 : f32
    %56 = vector.broadcast %cst_12 : f32 to vector<32x512xf32>
    %57 = arith.mulf %56, %55 : vector<32x512xf32>
    %58 = arith.mulf %45, %57 : vector<32x512xf32>
    %59 = arith.addf %30, %44 : vector<32x512xf32>
    %60 = arith.mulf %59, %59 : vector<32x512xf32>
    %61 = arith.mulf %59, %60 : vector<32x512xf32>
    %cst_13 = arith.constant 4.471500e-02 : f32
    %62 = vector.broadcast %cst_13 : f32 to vector<32x512xf32>
    %63 = arith.mulf %62, %61 : vector<32x512xf32>
    %64 = arith.addf %59, %63 : vector<32x512xf32>
    %cst_14 = arith.constant 0.797884583 : f32
    %65 = vector.broadcast %cst_14 : f32 to vector<32x512xf32>
    %66 = arith.mulf %65, %64 : vector<32x512xf32>
    %67 = math.tanh %66 : vector<32x512xf32>
    %cst_15 = arith.constant 1.000000e+00 : f32
    %68 = vector.broadcast %cst_15 : f32 to vector<32x512xf32>
    %69 = arith.addf %68, %67 : vector<32x512xf32>
    %cst_16 = arith.constant 5.000000e-01 : f32
    %70 = vector.broadcast %cst_16 : f32 to vector<32x512xf32>
    %71 = arith.mulf %70, %69 : vector<32x512xf32>
    %72 = arith.mulf %59, %71 : vector<32x512xf32>
    %73 = arith.subf %72, %58 : vector<32x512xf32>
    %74 = vector.broadcast %0 : f32 to vector<32x512xf32>
    %75 = arith.mulf %73, %74 : vector<32x512xf32>
    %76 = arith.addf %58, %75 : vector<32x512xf32>
    %cst_17 = arith.constant dense<0.000000e+00> : vector<4x512xf32>
    %77 = tpu.matmul %8, %76, %cst_17 {dimension_numbers = #tpu.dot_dimension_numbers<[1], [0], [0], [1], [0, 0, 1, 1], [], []>} : vector<4x32xf32>, vector<32x512xf32>, vector<4x512xf32> -> vector<4x512xf32>
    %78 = vector.broadcast %9 : vector<4x1xf32> to vector<4x512xf32>
    %79 = arith.addf %77, %78 : vector<4x512xf32>
    %80 = vector.extract_strided_slice %79 {offsets = [0, 0], sizes = [4, 256], strides = [1, 1]} : vector<4x512xf32> to vector<4x256xf32>
    %81 = vector.extract_strided_slice %79 {offsets = [0, 256], sizes = [4, 256], strides = [1, 1]} : vector<4x512xf32> to vector<4x256xf32>
    %82 = tpu.concatenate %80, %81 in 0 : vector<4x256xf32>, vector<4x256xf32> -> vector<8x256xf32>
    %c0_18 = arith.constant 0 : index
    %c0_19 = arith.constant 0 : index
    %83 = vector.load %arg3[%c0_18, %c0_19] : memref<8x256xf32, #tpu.memory_space<vmem>>, vector<8x256xf32>
    tpu.vector_store %arg3[%c0_18, %c0_19], %82 {strides = array<i32>} : memref<8x256xf32, #tpu.memory_space<vmem>>, vector<8x256xf32>,
    return
  }
}

</mosaic_0001>

<bundles_post_ra>
// kernel: tpu_custom_call.1
= control target key start
LH: loop header
LB: loop body
LE: loop exit
PB: predicated region body
PF: predicated region fallthrough
CT: control target
= control target key end

     0   :  { %8 = vsyncpa [#allocation5], 0  ;;  %s1558_s0 = inlined_call_operand.hbm [shape: f32[3], index: 0, kind: input, shape index: {}]   ;;  %s1559_s1 = inlined_call_operand.hbm [shape: f32[8,256], index: 1, kind: input, shape index: {}]   ;;  %s1560_s2 = inlined_call_operand.hbm [shape: f32[48,128], index: 2, kind: input, shape index: {}]   ;;  %s1561_s3 = inlined_call_operand.hbm [shape: f32[8,256], index: 3, kind: output, shape index: {}]  }
   0x1   :  { %9 = vsyncpa [#allocation3], 0 }
   0x2   :  { %10 = vsyncpa [#allocation8], 0 }
   0x3   :  { %11 = vsyncpa [#allocation4], 0  ;;  %s17_s14 = sshll.u32 %s1558_s0, 4  ;;  %s26_s17 = sshll.u32 %s1559_s1, 4  ;;  %s18_s14 = int_to_ptr.hbm [resolvable:$true] %s17_s14  ;;  %s27_s17 = int_to_ptr.hbm [resolvable:$true] %s26_s17 }
   0x4   :  { %s1088_s18 = smov [#allocation2]   ;;  %s1089_s19 = smov [#allocation6]  }
   0x5   :  { %20 = dma.hbm_to_smem %s18_s14, 16, %s1088_s18, [#allocation5]  }
   0x6   :  { %s28_s20 = sshll.u32 %s1089_s19, 4  ;;  %s36_s23 = sshll.u32 %s1560_s2, 4  ;;  %s29_s20 = int_to_ptr.vmem [resolvable:$true] %s28_s20  ;;  %s37_s23 = int_to_ptr.hbm [resolvable:$true] %s36_s23 }
   0x7   :  { %31 = dma.hbm_to_vmem [thread:$0]  %s27_s17, 256, %s29_s20, [#allocation3]  }
   0x8   :  { %s1090_s24 = smov [#allocation7]   ;;  %s1091_s0 = smov 128  }
   0x9   :  { %s38_s25 = sshll.u32 %s1090_s24, 4  ;;  %s1092_s26 = smov 8   ;;  %s39_s25 = int_to_ptr.vmem [resolvable:$true] %s38_s25 }
   0xa   :  { %44 = dma.hbm_to_vmem [thread:$0]  %s37_s23, 768, %s39_s25, [#allocation8], %s1091_s0, %s1091_s0, %s1092_s26  }
   0xb   :  { %1080 = dma.done.wait [#allocation5], 16  }
   0xc   :  { %1081 = vsyncadd [#allocation5], 4294967280 }
   0xd   :  { %1082 = dma.done.wait [#allocation3], 256  }
   0xe   :  { %1083 = vsyncadd [#allocation3], 4294967040 }
   0xf   :  { %1084 = dma.done.wait [#allocation8], 768  }
  0x10   :  { %1085 = vsyncadd [#allocation8], 4294966528 }
  0x11   :  { %57 = sfence }
  0x12   :  { %v1130_v0 = vld [vmem:[#allocation7 + $0x20] sm:$0xff]  ;;  %v1132_v1 = vld [vmem:[#allocation7 + $0x18] sm:$0xff]  ;;  %s1093_s1 = smov 123   ;;  %v1136_v2 = vld [vmem:[#allocation7 + $0x8] sm:$0xff]  ;;  %s131_s2 = sld [smem:[#allocation2]]  ;;  %v1094_v6 = vmov 4  }
  0x13   :  { %91 = vrot.lane.b32.xlu0 %v1130_v0, %s1093_s1  ;;  %89 = vrot.lane.b32.xlu1 %v1132_v1, %s1093_s1  ;;  %v1138_v3 = vld [vmem:[#allocation7 + $0x10] sm:$0xff]  ;;  %v59_v4 = vld [vmem:[#allocation7] sm:$0xff]  ;;  %s870_s27 = sld [smem:[#allocation2 + $0x1]]  ;;  %vm93_vm2 = vcmask 64512   ;;  %v160_v22 = vld [vmem:[#allocation6 + $0x8] sm:$0xff]  ;;  %vm182_vm7 = vcmask 1043456  }
  0x14   :  { %895 = vmatpush.msra.mxu2 %v59_v4  ;;  %896 = vmatpush.msra.mxu3 %v59_v4  ;;  %v159_v20 = vld [vmem:[#allocation6] sm:$0xff]  ;;  %v164_v26 = vrot.slane %v160_v22, 4  ;;  %vm173_vm8 = vcmask 31744   ;;  %v1095_v36 = vmov 2   ;;  %v1096_v37 = vmov 1   ;;  %s1422_s5 = sld [smem:[#allocation2 + $0x2]] }
  0x15   :  { %117 = vmatpush.msra.mxu0 %v59_v4  ;;  %912 = vset.pattern.permute.xlu1 %v1094_v6  ;;  %v163_v25 = vrot.slane %v159_v20, 4  ;;  %v1097_v38 = vmov 0   ;;  %v1098_v51 = vmov 3   ;;  %vm753_vm9 = vcmask 261120   ;;  %s1100_s6 = smov [#allocation9]   ;;  %s853_s10 = sshll.u32 %s1561_s3, 4  ;;  %s854_s10 = int_to_ptr.hbm [resolvable:$true] %s853_s10 }
  0x16   :  { %911 = vset.pattern.permute.xlu0 %v1094_v6  ;;  %910 = vset.pattern.permute.xlu2 %v1094_v6  ;;  %s851_s7 = sshll.u32 %s1100_s6, 4  ;;  %s852_s7 = int_to_ptr.vmem [resolvable:$true] %s851_s7 }
  0x17   :  { %82 = vperm.xlu2 %910, %v1130_v0  }
  0x18   :  { %s132_s28 = smul.f32 %s131_s2, %s131_s2 }
  0x19   :  { %s146_s29 = smul.f32 %s870_s27, %s870_s27 }
  0x1a   :  { %s133_s30 = sadd.f32 1.0, %s132_s28 }
  0x1b   :  { %85 = vrot.lane.b32.xlu0 %v1136_v2, %s1093_s1  ;;  %87 = vrot.lane.b32.xlu1 %v1138_v3, %s1093_s1  ;;  %s147_s4 = sadd.f32 1.0, %s146_s29 }
  0x1c   :  { %v134_v5 = vstv %s133_s30 }
  0x1d   :  { %928 = vrsqrt.f32 %v134_v5  ;;  %v148_v7 = vstv %s147_s4  ;;  %vm141_vm0 = vweird.f32 %v134_v5 }
  0x1e   :  { %930 = vrsqrt.f32 %v148_v7  ;;  %vm155_vm3 = vweird.f32 %v148_v7 }
  0x1f   :  { %77 = vperm.xlu2 %910, %v1132_v1  }
  0x23   :  { %67 = vperm.xlu1 %912, %v1136_v2   ;;  %72 = vperm.xlu0 %911, %v1138_v3   ;;  %v929_v8 = vpop.eup %928 }
  0x24   :  { %v931_v9 = vpop.eup %930  ;;  %v136_v10 = vmul.f32 %v929_v8, %v134_v5  ;;  %vm142_vm1 = vweird.f32 %v929_v8 }
  0x25   :  { %v150_v11 = vmul.f32 %v931_v9, %v148_v7  ;;  %vm156_vm4 = vweird.f32 %v931_v9  ;;  %vm143_vm5 = vmor %vm141_vm0, %vm142_vm1 }
  0x26   :  { %v137_v12 = vmul.f32 %v929_v8, %v136_v10  ;;  %vm157_vm6 = vmor %vm155_vm3, %vm156_vm4 }
  0x27   :  { %v151_v13 = vmul.f32 %v931_v9, %v150_v11  ;;  %913 = vset.pattern.permute.xlu2 %v1097_v38 }
  0x28   :  { %v138_v14 = vmul.f32 0.5, %v137_v12 }
  0x29   :  { %v152_v15 = vmul.f32 0.5, %v151_v13 }
  0x2a   :  { %v139_v16 = vsub.f32 1.5, %v138_v14 }
  0x2b   :  { %v153_v19 = vsub.f32 1.5, %v152_v15  ;;  %916 = vset.pattern.permute.xlu1 %v1095_v36  ;;  %917 = vset.pattern.permute.xlu0 %v1096_v37 }
  0x2c   :  { %v140_v21 = vmul.f32 %v929_v8, %v139_v16 }
  0x2d   :  { %v154_v23 = vmul.f32 %v931_v9, %v153_v19 }
  0x2e   :  { %v144_v24 = vsel %vm143_vm5, %v929_v8, %v140_v21 }
  0x2f   :  { %v167_v27 = vperm.slane %v144_v24, 0  ;;  %v158_v28 = vsel %vm157_vm6, %v931_v9, %v154_v23 }
  0x30   :  { %v168_v29 = vperm.slane %v158_v28, 0 }
  0x31   :  { %v170_v30 = vmul.f32 %v167_v27, %v160_v22  ;;  %v169_v31 = vmul.f32 %v167_v27, %v159_v20 }
  0x32   :  { %v171_v32 = vmul.f32 %v168_v29, %v163_v25  ;;  %v172_v33 = vmul.f32 %v168_v29, %v164_v26 }
  0x33   :  { %876 = vmatpush.msk.msrb.mxu2 %vm182_vm7, %v170_v30  ;;  %871 = vmatpush.msk.msra.mxu1 %vm182_vm7, %v169_v31 }
  0x34   :  { %881 = vmatpush.msk.msrb.mxu3 %vm182_vm7, %v171_v32  ;;  %872 = vmatmul.msk.f32.vlgmr.msra.gmra.mxu1 %vm173_vm8, %v1136_v2 }
  0x35   :  { %886 = vmatpush.msk.msrb.mxu0 %vm182_vm7, %v172_v33 }
  0x3c   :  { %873 = vmatmul.msk.f32.gmra.mxu1 %vm173_vm8, %v1138_v3 }
  0x44   :  { %874 = vmatmul.msk.f32.gmra.mxu1 %vm173_vm8, %v1132_v1 }
  0x4c   :  { %875 = vmatmul.msk.f32.gmra.mxu1 %vm173_vm8, %v1130_v0 }
  0x71   :  { %v83_v39 = vpop.permute.xlu2 %82 }
  0x79   :  { %v78_v45 = vpop.permute.xlu2 %77 }
  0x85   :  { %v92_v17 = vpop.permute.xlu0 %91  ;;  %v90_v18 = vpop.permute.xlu1 %89 }
  0x86   :  { %868 = vmatmul.msk.f32.vlgmr.msra.gmra.mxu2 %vm93_vm2, %v90_v18  ;;  %869 = vmatmul.msk.f32.vlgmr.msra.gmra.mxu3 %vm93_vm2, %v92_v17 }
  0x8d   :  { %v86_v34 = vpop.permute.xlu0 %85  ;;  %v88_v35 = vpop.permute.xlu1 %87 }
  0x8e   :  { %866 = vmatmul.msk.f32.vlgmr.msra.gmra.mxu0 %vm93_vm2, %v86_v34  ;;  %877 = vmatmul.msk.f32.vlgmr.msrb.gmra.mxu2 %vm173_vm8, %v1136_v2 }
  0x8f   :  { %882 = vmatmul.msk.f32.vlgmr.msrb.gmra.mxu3 %vm173_vm8, %v1136_v2 }
  0x95   :  { %v68_v41 = vpop.permute.xlu1 %67  ;;  %v73_v47 = vpop.permute.xlu0 %72 }
  0x96   :  { %867 = vmatmul.msk.f32.gmra.mxu0 %vm93_vm2, %v88_v35  ;;  %878 = vmatmul.msk.f32.gmra.mxu2 %vm173_vm8, %v1138_v3 }
  0x97   :  { %883 = vmatmul.msk.f32.gmra.mxu3 %vm173_vm8, %v1138_v3 }
  0x9e   :  { %887 = vmatmul.msk.f32.vlgmr.msrb.gmra.mxu0 %vm173_vm8, %v1136_v2  ;;  %879 = vmatmul.msk.f32.gmra.mxu2 %vm173_vm8, %v1132_v1 }
  0x9f   :  { %884 = vmatmul.msk.f32.gmra.mxu3 %vm173_vm8, %v1132_v1 }
  0xa6   :  { %888 = vmatmul.msk.f32.gmra.mxu0 %vm173_vm8, %v1138_v3  ;;  %880 = vmatmul.msk.f32.gmra.mxu2 %vm173_vm8, %v1130_v0 }
  0xa7   :  { %885 = vmatmul.msk.f32.gmra.mxu3 %vm173_vm8, %v1130_v0 }
  0xae   :  { %889 = vmatmul.msk.f32.gmra.mxu0 %vm173_vm8, %v1132_v1 }
  0xb1   :  { %v212_v52 = vpop.f32.mrf.mxu1 }
  0xb6   :  { %890 = vmatmul.msk.f32.gmra.mxu0 %vm173_vm8, %v1130_v0 }
  0xb9   :  { %v1190_v56 = vpop.f32.mrf.mxu1 }
  0xc1   :  { %v1200_v62 = vpop.f32.mrf.mxu1 }
  0xc9   :  { %v221_v14 = vpop.f32.mrf.mxu1 }
 0x109   :  { %v128_v40 = vpop.f32.mrf.mxu3  ;;  %v125_v46 = vpop.f32.mrf.mxu2 }
 0x10a   :  { %v129_v42 = vadd.f32 %v128_v40, %v83_v39  ;;  %v126_v48 = vadd.f32 %v125_v46, %v78_v45 }
 0x10b   :  { %v119_v43 = vpop.f32.mrf.mxu0 }
 0x10c   :  { %v120_v44 = vadd.f32 %v119_v43, %v68_v41  ;;  %344 = vperm.xlu0 %917, %v129_v42   ;;  %360 = vperm.xlu1 %916, %v129_v42  }
 0x10e   :  { %313 = vperm.xlu2 %913, %v120_v44  }
 0x111   :  { %v241_v53 = vpop.f32.mrf.mxu2 }
 0x112   :  { %v1186_v54 = vpop.f32.mrf.mxu3 }
 0x113   :  { %v122_v49 = vpop.f32.mrf.mxu0 }
 0x114   :  { %v123_v50 = vadd.f32 %v122_v49, %v73_v47  ;;  %356 = vperm.xlu1 %916, %v126_v48   ;;  %922 = vset.pattern.permute.xlu0 %v1095_v36 }
 0x116   :  { %352 = vperm.xlu0 %922, %v123_v50   ;;  %914 = vset.pattern.permute.xlu2 %v1095_v36 }
 0x117   :  { %348 = vperm.xlu2 %914, %v120_v44  }
 0x119   :  { %v1192_v57 = vpop.f32.mrf.mxu2 }
 0x11a   :  { %v1194_v59 = vpop.f32.mrf.mxu3 }
 0x11b   :  { %v1188_v55 = vpop.f32.mrf.mxu0 }
 0x11c   :  { %920 = vset.pattern.permute.xlu1 %v1098_v51 }
 0x11d   :  { %372 = vperm.xlu1 %920, %v126_v48  }
 0x11e   :  { %924 = vset.pattern.permute.xlu0 %v1098_v51 }
 0x11f   :  { %368 = vperm.xlu0 %924, %v123_v50   ;;  %915 = vset.pattern.permute.xlu2 %v1097_v38 }
 0x120   :  { %328 = vperm.xlu2 %915, %v129_v42  }
 0x121   :  { %v1202_v63 = vpop.f32.mrf.mxu2 }
 0x122   :  { %v1210_v4 = vpop.f32.mrf.mxu3 }
 0x123   :  { %v1196_v60 = vpop.f32.mrf.mxu0 }
 0x125   :  { %921 = vset.pattern.permute.xlu1 %v1097_v38 }
 0x126   :  { %318 = vperm.xlu1 %921, %v123_v50  }
 0x128   :  { %323 = vperm.xlu2 %915, %v126_v48  }
 0x129   :  { %v250_v15 = vpop.f32.mrf.mxu2 }
 0x12a   :  { %v279_v23 = vpop.f32.mrf.mxu3 }
 0x12b   :  { %v1213_v6 = vpop.f32.mrf.mxu0 }
 0x12e   :  { %923 = vset.pattern.permute.xlu1 %v1096_v37 }
 0x12f   :  { %336 = vperm.xlu1 %923, %v123_v50  }
 0x130   :  { %918 = vset.pattern.permute.xlu2 %v1098_v51 }
 0x131   :  { %376 = vperm.xlu2 %918, %v129_v42  }
 0x133   :  { %v1234_v27 = vpop.f32.mrf.mxu0 }
 0x137   :  { %332 = vperm.xlu1 %923, %v120_v44  }
 0x139   :  { %919 = vset.pattern.permute.xlu2 %v1096_v37 }
 0x13a   :  { %340 = vperm.xlu2 %919, %v126_v48  }
 0x142   :  { %925 = vset.pattern.permute.xlu2 %v1098_v51 }
 0x143   :  { %364 = vperm.xlu2 %925, %v120_v44  }
 0x168   :  { %v314_v58 = vpop.permute.xlu2 %313 }
 0x169   :  { %v1198_v61 = vadd.f32 %v314_v58, %v212_v52  ;;  %v1215_v7 = vadd.f32 %v314_v58, %v241_v53 }
 0x16b   :  { %v395_v0 = vmul.f32 %v1198_v61, %v1198_v61  ;;  %1566 = vst [vmem:[#allocation15_spill] sm:$0xff] %v1215_v7  ;;  %v396_v12 = vmul.f32 %v1215_v7, %v1215_v7 }
 0x16d   :  { %v411_v5 = vmul.f32 %v395_v0, %v1198_v61  ;;  %v412_v22 = vmul.f32 %v396_v12, %v1215_v7 }
 0x16f   :  { %v427_v11 = vmul.f32 0.044715, %v411_v5  ;;  %v428_v34 = vmul.f32 0.044715, %v412_v22 }
 0x171   :  { %v349_v1 = vpop.permute.xlu2 %348  ;;  %v443_v21 = vadd.f32 %v427_v11, %v1198_v61  ;;  %v444_v50 = vadd.f32 %v428_v34, %v1215_v7 }
 0x172   :  { %v1206_v2 = vadd.f32 %v349_v1, %v212_v52  ;;  %v1208_v3 = vadd.f32 %v349_v1, %v241_v53 }
 0x173   :  { %v459_v33 = vmul.f32 0.7978846, %v443_v21 }
 0x174   :  { %1565 = vst [vmem:[#allocation14_spill] sm:$0xff] %v1208_v3  ;;  %v556_v8 = vmul.f32 %v1208_v3, %v1208_v3  ;;  %v555_v9 = vmul.f32 %v1206_v2, %v1206_v2 }
 0x176   :  { %v572_v10 = vmul.f32 %v556_v8, %v1208_v3  ;;  %v571_v16 = vmul.f32 %v555_v9, %v1206_v2 }
 0x178   :  { %v588_v13 = vmul.f32 0.044715, %v572_v10  ;;  %v587_v24 = vmul.f32 0.044715, %v571_v16 }
 0x17a   :  { %v604_v17 = vadd.f32 %v588_v13, %v1208_v3  ;;  %v329_v18 = vpop.permute.xlu2 %328  ;;  %v603_v38 = vadd.f32 %v587_v24, %v1206_v2  ;;  %v1270_v13 = vmul.f32 0.7978846, %v444_v50 }
 0x17b   :  { %v1226_v19 = vadd.f32 %v329_v18, %v221_v14  ;;  %v1228_v20 = vadd.f32 %v329_v18, %v250_v15 }
 0x17c   :  { %v620_v25 = vmul.f32 0.7978846, %v604_v17  ;;  %v619_v51 = vmul.f32 0.7978846, %v603_v38 }
 0x17d   :  { %v408_v26 = vmul.f32 %v1228_v20, %v1228_v20  ;;  %v407_v28 = vmul.f32 %v1226_v19, %v1226_v19 }
 0x17e   :  { %v345_v29 = vpop.permute.xlu0 %344  ;;  %v361_v30 = vpop.permute.xlu1 %360  ;;  %932 = vtanh.f32 %v620_v25 }
 0x17f   :  { %v424_v31 = vmul.f32 %v408_v26, %v1228_v20  ;;  %v1239_v32 = vadd.f32 %v345_v29, %v279_v23  ;;  %v1241_v35 = vadd.f32 %v361_v30, %v221_v14  ;;  %v1243_v36 = vadd.f32 %v361_v30, %v250_v15 }
 0x180   :  { %v1246_v37 = vadd.f32 %v345_v29, %v1234_v27  ;;  %v423_v41 = vmul.f32 %v407_v28, %v1226_v19  ;;  %934 = vtanh.f32 %v459_v33 }
 0x181   :  { %v440_v39 = vmul.f32 0.044715, %v424_v31  ;;  %v409_v40 = vmul.f32 %v1239_v32, %v1239_v32  ;;  %v567_v42 = vmul.f32 %v1241_v35, %v1241_v35  ;;  %v568_v43 = vmul.f32 %v1243_v36, %v1243_v36 }
 0x182   :  { %v410_v44 = vmul.f32 %v1246_v37, %v1246_v37  ;;  %v324_v45 = vpop.permute.xlu2 %323  ;;  %v439_v53 = vmul.f32 0.044715, %v423_v41  ;;  %936 = vtanh.f32 %v619_v51 }
 0x183   :  { %v425_v46 = vmul.f32 %v409_v40, %v1239_v32  ;;  %v456_v47 = vadd.f32 %v440_v39, %v1228_v20  ;;  %v584_v48 = vmul.f32 %v568_v43, %v1243_v36  ;;  %v1264_v52 = vadd.f32 %v324_v45, %v1200_v62 }
 0x184   :  { %v426_v49 = vmul.f32 %v410_v44, %v1246_v37  ;;  %v583_v58 = vmul.f32 %v567_v42, %v1241_v35  ;;  %v933_v5 = vpop.eup %932  ;;  %v1268_v9 = vadd.f32 %v324_v45, %v1202_v63  ;;  %v1279_v21 = vadd.f32 %v439_v53, %v1226_v19 }
 0x185   :  { %v600_v0 = vmul.f32 0.044715, %v584_v48  ;;  %v441_v8 = vmul.f32 0.044715, %v425_v46  ;;  %v472_v10 = vmul.f32 0.7978846, %v456_v47  ;;  %v403_v14 = vmul.f32 %v1264_v52, %v1264_v52 }
 0x186   :  { %v357_v1 = vpop.permute.xlu1 %356  ;;  %v442_v11 = vmul.f32 0.044715, %v426_v49  ;;  %v935_v12 = vpop.eup %934  ;;  %v599_v16 = vmul.f32 0.044715, %v583_v58  ;;  %v652_v22 = vadd.f32 1.0, %v933_v5  ;;  %v404_v25 = vmul.f32 %v1268_v9, %v1268_v9 }
 0x187   :  { %v616_v17 = vadd.f32 %v600_v0, %v1243_v36  ;;  %v1276_v18 = vadd.f32 %v357_v1, %v1200_v62  ;;  %v457_v24 = vadd.f32 %v441_v8, %v1239_v32  ;;  %v1285_v26 = vadd.f32 %v357_v1, %v1202_v63 }
 0x188   :  { %v353_v15 = vpop.permute.xlu0 %352  ;;  %938 = vtanh.f32 %v472_v10  ;;  %v458_v29 = vadd.f32 %v442_v11, %v1246_v37  ;;  %v1291_v62 = vadd.f32 1.0, %v935_v12  ;;  %v1294_v31 = vmul.f32 %v403_v14, %v1264_v52  ;;  %v1308_v42 = vpop.eup %936 }
 0x189   :  { %v1289_v30 = vadd.f32 %v353_v15, %v1192_v57  ;;  %v564_v33 = vmul.f32 %v1285_v26, %v1285_v26  ;;  %v1299_v34 = vadd.f32 %v353_v15, %v1190_v56  ;;  %v615_v38 = vadd.f32 %v599_v16, %v1241_v35 }
 0x18a   :  { %v632_v39 = vmul.f32 0.7978846, %v616_v17  ;;  %v563_v40 = vmul.f32 %v1276_v18, %v1276_v18  ;;  %v473_v43 = vmul.f32 0.7978846, %v457_v24  ;;  %v474_v47 = vmul.f32 0.7978846, %v458_v29 }
 0x18b   :  { %v377_v28 = vpop.permute.xlu2 %376  ;;  %v560_v41 = vmul.f32 %v1289_v30, %v1289_v30  ;;  %v580_v44 = vmul.f32 %v564_v33, %v1285_v26  ;;  %v559_v53 = vmul.f32 %v1299_v34, %v1299_v34  ;;  %v631_v15 = vmul.f32 0.7978846, %v615_v38 }
 0x18c   :  { %v1301_v63 = vadd.f32 %v377_v28, %v279_v23  ;;  %v1312_v45 = vadd.f32 %v377_v28, %v1234_v27  ;;  %940 = vtanh.f32 %v632_v39  ;;  %v579_v1 = vmul.f32 %v563_v40, %v1276_v18 }
 0x18d   :  { %v576_v48 = vmul.f32 %v560_v41, %v1289_v30  ;;  %v596_v51 = vmul.f32 0.044715, %v580_v44  ;;  %v420_v16 = vmul.f32 %v404_v25, %v1268_v9  ;;  %942 = vtanh.f32 %v474_v47 }
 0x18e   :  { %v569_v23 = vmul.f32 %v1301_v63, %v1301_v63  ;;  %v570_v27 = vmul.f32 %v1312_v45, %v1312_v45  ;;  %v1328_v0 = vpop.eup %938  ;;  %v575_v29 = vmul.f32 %v559_v53, %v1299_v34  ;;  %v1341_v39 = vmul.f32 0.5, %v652_v22 }
 0x18f   :  { %v373_v46 = vpop.permute.xlu1 %372  ;;  %v592_v5 = vmul.f32 0.044715, %v576_v48  ;;  %v612_v10 = vadd.f32 %v596_v51, %v1285_v26  ;;  %944 = vtanh.f32 %v473_v43  ;;  %v595_v44 = vmul.f32 0.044715, %v579_v1 }
 0x190   :  { %v1318_v49 = vadd.f32 %v373_v46, %v1210_v4  ;;  %v1321_v50 = vadd.f32 %v373_v46, %v1213_v6  ;;  %v585_v58 = vmul.f32 %v569_v23, %v1301_v63  ;;  %v586_v11 = vmul.f32 %v570_v27, %v1312_v45  ;;  %1568 = vst [vmem:[#allocation17_spill] sm:$0xff] %v1341_v39 }
 0x191   :  { %v608_v17 = vadd.f32 %v592_v5, %v1289_v30  ;;  %v628_v28 = vmul.f32 0.7978846, %v612_v10  ;;  %v369_v23 = vpop.permute.xlu0 %368  ;;  %v436_v47 = vmul.f32 0.044715, %v420_v16  ;;  %v591_v27 = vmul.f32 0.044715, %v575_v29 }
 0x192   :  { %1567 = vst [vmem:[#allocation16_spill] sm:$0xff] %v1321_v50  ;;  %v565_v8 = vmul.f32 %v1318_v49, %v1318_v49  ;;  %v601_v12 = vmul.f32 0.044715, %v585_v58  ;;  %v566_v14 = vmul.f32 %v1321_v50, %v1321_v50  ;;  %v602_v33 = vmul.f32 0.044715, %v586_v11  ;;  %v941_v46 = vpop.eup %940 }
 0x193   :  { %v624_v40 = vmul.f32 0.7978846, %v608_v17  ;;  %946 = vtanh.f32 %v628_v28  ;;  %v1348_v1 = vadd.f32 %v369_v23, %v1194_v59  ;;  %v1351_v5 = vadd.f32 %v369_v23, %v1196_v60 }
 0x194   :  { %v581_v24 = vmul.f32 %v565_v8, %v1318_v49  ;;  %v617_v41 = vadd.f32 %v601_v12, %v1301_v63  ;;  %v618_v38 = vadd.f32 %v602_v33, %v1312_v45  ;;  %v582_v25 = vmul.f32 %v566_v14, %v1321_v50  ;;  %v341_v53 = vpop.permute.xlu2 %340  ;;  %v943_v8 = vpop.eup %942 }
 0x195   :  { %948 = vtanh.f32 %v631_v15  ;;  %v611_v10 = vadd.f32 %v595_v44, %v1276_v18  ;;  %v1355_v11 = vadd.f32 %v341_v53, %v1210_v4  ;;  %v1358_v12 = vadd.f32 %v341_v53, %v1213_v6  ;;  %v1360_v14 = vpop.eup %944 }
 0x196   :  { %v633_v48 = vmul.f32 0.7978846, %v617_v41  ;;  %v597_v51 = vmul.f32 0.044715, %v581_v24  ;;  %950 = vtanh.f32 %v624_v40  ;;  %v634_v22 = vmul.f32 0.7978846, %v618_v38 }
 0x197   :  { %v598_v43 = vmul.f32 0.044715, %v582_v25  ;;  %v664_v15 = vadd.f32 1.0, %v941_v46  ;;  %v561_v17 = vmul.f32 %v1348_v1, %v1348_v1  ;;  %v562_v24 = vmul.f32 %v1351_v5, %v1351_v5 }
 0x198   :  { %952 = vtanh.f32 %v633_v48  ;;  %v613_v58 = vadd.f32 %v597_v51, %v1318_v49  ;;  %v607_v29 = vadd.f32 %v591_v27, %v1299_v34  ;;  %v405_v4 = vmul.f32 %v1355_v11, %v1355_v11  ;;  %v319_v40 = vpop.permute.xlu1 %318 }
 0x199   :  { %954 = vtanh.f32 %v634_v22  ;;  %v614_v16 = vadd.f32 %v598_v43, %v1321_v50  ;;  %v947_v28 = vpop.eup %946  ;;  %v406_v6 = vmul.f32 %v1358_v12, %v1358_v12  ;;  %v506_v44 = vadd.f32 1.0, %v943_v8 }
 0x19a   :  { %v629_v33 = vmul.f32 0.7978846, %v613_v58  ;;  %v660_v38 = vadd.f32 1.0, %v947_v28  ;;  %v577_v25 = vmul.f32 %v561_v17, %v1348_v1  ;;  %v578_v23 = vmul.f32 %v562_v24, %v1351_v5 }
 0x19b   :  { %v949_v41 = vpop.eup %948  ;;  %v452_v48 = vadd.f32 %v436_v47, %v1268_v9  ;;  %v627_v51 = vmul.f32 0.7978846, %v611_v10  ;;  %v421_v53 = vmul.f32 %v405_v4, %v1355_v11  ;;  %v422_v27 = vmul.f32 %v406_v6, %v1358_v12 }
 0x19c   :  { %v951_v46 = vpop.eup %950  ;;  %v680_v43 = vmul.f32 0.5, %v664_v15  ;;  %v630_v7 = vmul.f32 0.7978846, %v614_v16  ;;  %v1378_v50 = vadd.f32 %v319_v40, %v1190_v56  ;;  %956 = vtanh.f32 %v629_v33 }
 0x19d   :  { %v656_v58 = vadd.f32 1.0, %v951_v46  ;;  %v593_v17 = vmul.f32 0.044715, %v577_v25  ;;  %v1381_v24 = vadd.f32 %v319_v40, %v1192_v57  ;;  %v522_v47 = vmul.f32 0.5, %v506_v44  ;;  %v365_v40 = vpop.permute.xlu2 %364 }
 0x19e   :  { %v953_v22 = vpop.eup %952  ;;  %v676_v10 = vmul.f32 0.5, %v660_v38  ;;  %v623_v39 = vmul.f32 0.7978846, %v607_v29  ;;  %v594_v4 = vmul.f32 0.044715, %v578_v23  ;;  %958 = vtanh.f32 %v627_v51 }
 0x19f   :  { %v955_v8 = vpop.eup %954  ;;  %v665_v28 = vadd.f32 1.0, %v953_v22  ;;  %v672_v6 = vmul.f32 0.5, %v656_v58  ;;  %v437_v3 = vmul.f32 0.044715, %v421_v53  ;;  %v438_v15 = vmul.f32 0.044715, %v422_v27 }
 0x1a0   :  { %v435_v16 = vmul.f32 0.044715, %v1294_v31  ;;  %v1384_v46 = vmul.f32 0.7978846, %v452_v48  ;;  %v666_v56 = vadd.f32 1.0, %v955_v8  ;;  %960 = vtanh.f32 %v630_v7 }
 0x1a1   :  { %v681_v22 = vmul.f32 0.5, %v665_v28  ;;  %v609_v33 = vadd.f32 %v593_v17, %v1348_v1  ;;  %v399_v57 = vmul.f32 %v1378_v50, %v1378_v50  ;;  %v400_v29 = vmul.f32 %v1381_v24, %v1381_v24  ;;  %v337_v53 = vpop.permute.xlu1 %336 }
 0x1a2   :  { %v1392_v44 = vmul.f32 %v680_v43, %v1243_v36  ;;  %v1395_v38 = vmul.f32 %v522_v47, %v1246_v37  ;;  %v1398_v31 = vmul.f32 %v676_v10, %v1285_v26  ;;  %962 = vtanh.f32 %v623_v39  ;;  %v957_v7 = vpop.eup %956 }
 0x1a3   :  { %v1401_v25 = vmul.f32 %v672_v6, %v1289_v30  ;;  %v610_v23 = vadd.f32 %v594_v4, %v1351_v5  ;;  %v453_v48 = vadd.f32 %v437_v3, %v1355_v11  ;;  %v454_v51 = vadd.f32 %v438_v15, %v1358_v12 }
 0x1a4   :  { %v682_v36 = vmul.f32 0.5, %v666_v56  ;;  %v1407_v27 = vadd.f32 %v365_v40, %v1186_v54  ;;  %v1410_v37 = vadd.f32 %v365_v40, %v1188_v55  ;;  %v471_v26 = vmul.f32 0.7978846, %v1279_v21  ;;  %v959_v39 = vpop.eup %958 }
 0x1a5   :  { %v1414_v30 = vmul.f32 %v681_v22, %v1301_v63  ;;  %v625_v43 = vmul.f32 0.7978846, %v609_v33  ;;  %v415_v58 = vmul.f32 %v399_v57, %v1378_v50  ;;  %v416_v3 = vmul.f32 %v400_v29, %v1381_v24 }
 0x1a6   :  { %v961_v8 = vpop.eup %960  ;;  %v661_v28 = vadd.f32 1.0, %v957_v7  ;;  %v557_v17 = vmul.f32 %v1407_v27, %v1407_v27  ;;  %v558_v47 = vmul.f32 %v1410_v37, %v1410_v37  ;;  %964 = vtanh.f32 %v471_v26 }
 0x1a7   :  { %v626_v21 = vmul.f32 0.7978846, %v610_v23  ;;  %v663_v10 = vadd.f32 1.0, %v949_v41  ;;  %v504_v63 = vadd.f32 1.0, %v1328_v0  ;;  %v1426_v4 = vadd.f32 %v337_v53, %v1194_v59 }
 0x1a8   :  { %v1428_v6 = vpop.eup %962  ;;  %v573_v15 = vmul.f32 %v557_v17, %v1407_v27  ;;  %v574_v56 = vmul.f32 %v558_v47, %v1410_v37  ;;  %v1433_v22 = vadd.f32 %v337_v53, %v1196_v60  ;;  %v451_v33 = vadd.f32 %v435_v16, %v1264_v52 }
 0x1a9   :  { %v1437_v57 = vmul.f32 %v682_v36, %v1312_v45  ;;  %v469_v41 = vmul.f32 0.7978846, %v453_v48  ;;  %v432_v29 = vmul.f32 0.044715, %v416_v3  ;;  %v520_v0 = vmul.f32 0.5, %v504_v63 }
 0x1aa   :  { %v1439_v40 = vadd.f32 1.0, %v961_v8  ;;  %v589_v59 = vmul.f32 0.044715, %v573_v15  ;;  %v590_v7 = vmul.f32 0.044715, %v574_v56  ;;  %v401_v23 = vmul.f32 %v1426_v4, %v1426_v4 }
 0x1ab   :  { %v679_v26 = vmul.f32 0.5, %v663_v10  ;;  %v536_v17 = vmul.f32 %v520_v0, %v1228_v20  ;;  %v402_v60 = vmul.f32 %v1433_v22, %v1433_v22  ;;  %v467_v16 = vmul.f32 0.7978846, %v451_v33  ;;  %v333_v10 = vpop.permute.xlu1 %332 }
 0x1ac   :  { %v965_v45 = vpop.eup %964  ;;  %v1446_v53 = vmul.f32 0.5, %v661_v28  ;;  %966 = vtanh.f32 %v625_v43  ;;  %v1448_v48 = vmul.f32 0.7978846, %v454_v51  ;;  %v417_v36 = vmul.f32 %v401_v23, %v1426_v4 }
 0x1ad   :  { %v448_v3 = vadd.f32 %v432_v29, %v1381_v24  ;;  %v503_v8 = vadd.f32 1.0, %v965_v45  ;;  %v712_v47 = vsub.f32 %v1392_v44, %v536_v17  ;;  %v418_v20 = vmul.f32 %v402_v60, %v1433_v22 }
 0x1ae   :  { %968 = vtanh.f32 %v626_v21  ;;  %v605_v63 = vadd.f32 %v589_v59, %v1407_v27  ;;  %v606_v15 = vadd.f32 %v590_v7, %v1410_v37  ;;  %v1457_v28 = vstv %s1422_s5 }
 0x1af   :  { %v519_v43 = vmul.f32 0.5, %v503_v8  ;;  %v695_v51 = vmul.f32 %v679_v26, %v1241_v35  ;;  %v729_v56 = vmul.f32 %v1457_v28, %v712_v47  ;;  %970 = vtanh.f32 %v467_v16 }
 0x1b0   :  { %v431_v33 = vmul.f32 0.044715, %v415_v58  ;;  %v433_v29 = vmul.f32 0.044715, %v417_v36  ;;  %v659_v0 = vadd.f32 1.0, %v959_v39  ;;  %v1462_v44 = vadd.f32 %v333_v10, %v1186_v54 }
 0x1b1   :  { %v464_v23 = vmul.f32 0.7978846, %v448_v3  ;;  %v535_v21 = vmul.f32 %v519_v43, %v1226_v19  ;;  %v745_v59 = vadd.f32 %v729_v56, %v536_v17  ;;  %v434_v60 = vmul.f32 0.044715, %v418_v20 }
 0x1b2   :  { %v1465_v7 = vpop.eup %966  ;;  %v621_v45 = vmul.f32 0.7978846, %v605_v63  ;;  %v622_v8 = vmul.f32 0.7978846, %v606_v15  ;;  %972 = vtanh.f32 %v1384_v46  ;;  %v1469_v35 = vadd.f32 %v333_v10, %v1188_v55 }
 0x1b3   :  { %v711_v58 = vsub.f32 %v695_v51, %v535_v21  ;;  %788 = vmatpush.msra.mxu2 %v745_v59  ;;  %v675_v39 = vmul.f32 0.5, %v659_v0  ;;  %v397_v54 = vmul.f32 %v1462_v44, %v1462_v44  ;;  %v505_v26 = vadd.f32 1.0, %v1360_v14 }
 0x1b4   :  { %v1474_v19 = vpop.eup %968  ;;  %v449_v17 = vadd.f32 %v433_v29, %v1426_v4  ;;  %v398_v16 = vmul.f32 %v1469_v35, %v1469_v35  ;;  %974 = vtanh.f32 %v469_v41  ;;  %v447_v46 = vadd.f32 %v431_v33, %v1378_v50 }
 0x1b5   :  { %v971_v55 = vpop.eup %970  ;;  %v728_v36 = vmul.f32 %v1457_v28, %v711_v58  ;;  %v450_v3 = vadd.f32 %v434_v60, %v1433_v22  ;;  %v413_v47 = vmul.f32 %v397_v54, %v1462_v44  ;;  %v521_v20 = vmul.f32 0.5, %v505_v26 }
 0x1b6   :  { %v499_v10 = vadd.f32 1.0, %v971_v55  ;;  %v414_v14 = vmul.f32 %v398_v16, %v1469_v35  ;;  %v463_v63 = vmul.f32 0.7978846, %v447_v46  ;;  %976 = vtanh.f32 %v464_v23 }
 0x1b7   :  { %v744_v15 = vadd.f32 %v728_v36, %v535_v21  ;;  %v691_v43 = vmul.f32 %v675_v39, %v1276_v18  ;;  %v429_v51 = vmul.f32 0.044715, %v413_v47  ;;  %v537_v41 = vmul.f32 %v521_v20, %v1239_v32 }
 0x1b8   :  { %v973_v56 = vpop.eup %972  ;;  %v515_v33 = vmul.f32 0.5, %v499_v10  ;;  %v430_v29 = vmul.f32 0.044715, %v414_v14  ;;  %978 = vtanh.f32 %v463_v63  ;;  %v655_v0 = vadd.f32 1.0, %v1428_v6 }
 0x1b9   :  { %980 = vtanh.f32 %v621_v45  ;;  %768 = vmatpush.msrb.mxu1 %v744_v15  ;;  %v500_v59 = vadd.f32 1.0, %v973_v56  ;;  %v445_v60 = vadd.f32 %v429_v51, %v1462_v44  ;;  %v713_v58 = vsub.f32 %v1414_v30, %v537_v41 }
 0x1ba   :  { %v975_v23 = vpop.eup %974  ;;  %v1490_v21 = vmul.f32 0.5, %v1439_v40  ;;  %v693_v32 = vmul.f32 %v1446_v53, %v1318_v49  ;;  %982 = vtanh.f32 %v622_v8  ;;  %v531_v18 = vmul.f32 %v515_v33, %v1264_v52 }
 0x1bb   :  { %v465_v39 = vmul.f32 0.7978846, %v449_v17  ;;  %v466_v54 = vmul.f32 0.7978846, %v450_v3  ;;  %v516_v6 = vmul.f32 0.5, %v500_v59  ;;  %v730_v45 = vmul.f32 %v1457_v28, %v713_v58 }
 0x1bc   :  { %v977_v26 = vpop.eup %976  ;;  %v707_v16 = vsub.f32 %v691_v43, %v531_v18  ;;  %v446_v46 = vadd.f32 %v430_v29, %v1469_v35  ;;  %v501_v30 = vadd.f32 1.0, %v975_v23  ;;  %v671_v55 = vmul.f32 0.5, %v655_v0 }
 0x1bd   :  { %v532_v40 = vmul.f32 %v516_v6, %v1268_v9  ;;  %v461_v36 = vmul.f32 0.7978846, %v445_v60  ;;  %v746_v47 = vadd.f32 %v730_v45, %v537_v41  ;;  %v496_v20 = vadd.f32 1.0, %v977_v26  ;;  %v1570_v45 = vld [vmem:[#allocation17_spill] sm:$0xff] }
 0x1be   :  { %v979_v49 = vpop.eup %978  ;;  %v724_v53 = vmul.f32 %v1457_v28, %v707_v16  ;;  %v517_v52 = vmul.f32 0.5, %v501_v30  ;;  %v507_v8 = vmul.f32 0.5, %v1291_v62  ;;  %v651_v17 = vadd.f32 1.0, %v1308_v42 }
 0x1bf   :  { %v981_v3 = vpop.eup %980  ;;  %v708_v10 = vsub.f32 %v1398_v31, %v532_v40  ;;  %808 = vmatpush.msra.mxu3 %v746_v47  ;;  %v495_v14 = vadd.f32 1.0, %v979_v49  ;;  %v512_v63 = vmul.f32 0.5, %v496_v20  ;;  %984 = vtanh.f32 %v1270_v13 }
 0x1c0   :  { %v983_v9 = vpop.eup %982  ;;  %v740_v15 = vadd.f32 %v724_v53, %v531_v18  ;;  %v462_v43 = vmul.f32 0.7978846, %v446_v46  ;;  %v533_v51 = vmul.f32 %v517_v52, %v1355_v11  ;;  %v667_v41 = vmul.f32 0.5, %v651_v17  ;;  %v1572_v53 = vld [vmem:[#allocation15_spill] sm:$0xff] }
 0x1c1   :  { %v725_v56 = vmul.f32 %v1457_v28, %v708_v10  ;;  %v511_v33 = vmul.f32 0.5, %v495_v14  ;;  %v687_v62 = vmul.f32 %v671_v55, %v1299_v34  ;;  %v528_v42 = vmul.f32 %v512_v63, %v1381_v24 }
 0x1c2   :  { %769 = vmatpush.msrb.mxu1 %v740_v15  ;;  %v709_v31 = vsub.f32 %v693_v32, %v533_v51  ;;  %v523_v29 = vmul.f32 %v507_v8, %v1198_v61  ;;  %v683_v0 = vmul.f32 %v667_v41, %v1206_v2  ;;  %986 = vtanh.f32 %v1448_v48  ;;  %v1517_v48 = vld [vmem:[#allocation7 + $0x28] sm:$0xff] }
 0x1c3   :  { %v741_v13 = vadd.f32 %v725_v56, %v532_v40  ;;  %v527_v59 = vmul.f32 %v511_v33, %v1378_v50  ;;  %v704_v11 = vsub.f32 %v1401_v25, %v528_v42  ;;  %v714_v60 = vsub.f32 %v1437_v57, %v1395_v38 }
 0x1c4   :  { %v726_v34 = vmul.f32 %v1457_v28, %v709_v31  ;;  %v699_v58 = vsub.f32 %v683_v0, %v523_v29  ;;  %988 = vtanh.f32 %v465_v39  ;;  %v657_v23 = vadd.f32 1.0, %v1465_v7 }
 0x1c5   :  { %v985_v24 = vpop.eup %984  ;;  %789 = vmatpush.msra.mxu2 %v741_v13  ;;  %v703_v61 = vsub.f32 %v687_v62, %v527_v59  ;;  %v721_v2 = vmul.f32 %v1457_v28, %v704_v11  ;;  %990 = vtanh.f32 %v466_v54  ;;  %v1099_v50 = vmov 32   ;;  %v1569_v54 = vld [vmem:[#allocation14_spill] sm:$0xff] }
 0x1c6   :  { %926 = vset.pattern.permute.xlu1 %v1099_v50  ;;  %v658_v25 = vadd.f32 1.0, %v1474_v19  ;;  %v742_v32 = vadd.f32 %v726_v34, %v533_v51  ;;  %v492_v57 = vadd.f32 1.0, %v985_v24  ;;  %992 = vtanh.f32 %v461_v36  ;;  %927 = vset.pattern.permute.xlu0 %v1099_v50  ;;  %v1571_v36 = vld [vmem:[#allocation16_spill] sm:$0xff] }
 0x1c7   :  { %750 = vperm.xlu1 %926, %v1517_v48   ;;  %v720_v18 = vmul.f32 %v1457_v28, %v703_v61  ;;  %v737_v7 = vadd.f32 %v721_v2, %v528_v42  ;;  %v716_v39 = vmul.f32 %v1457_v28, %v699_v58  ;;  %994 = vtanh.f32 %v462_v43 }
 0x1c8   :  { %v987_v6 = vpop.eup %986  ;;  %v684_v26 = vmul.f32 %v1570_v45, %v1569_v54  ;;  %809 = vmatpush.msra.mxu3 %v742_v32  ;;  %v508_v16 = vmul.f32 0.5, %v492_v57  ;;  %v731_v19 = vmul.f32 %v1457_v28, %v714_v60  ;;  %v653_v46 = vadd.f32 1.0, %v981_v3 }
 0x1c9   :  { %v736_v30 = vadd.f32 %v720_v18, %v527_v59  ;;  %790 = vmatpush.msra.mxu2 %v737_v7  ;;  %v502_v55 = vadd.f32 1.0, %v987_v6  ;;  %v694_v47 = vmul.f32 %v1490_v21, %v1571_v36  ;;  %v673_v20 = vmul.f32 0.5, %v657_v23 }
 0x1ca   :  { %v989_v40 = vpop.eup %988  ;;  %v654_v49 = vadd.f32 1.0, %v983_v9  ;;  %v524_v52 = vmul.f32 %v508_v16, %v1572_v53  ;;  %v674_v17 = vmul.f32 0.5, %v658_v25  ;;  %v732_v10 = vadd.f32 %v716_v39, %v523_v29 }
 0x1cb   :  { %v991_v8 = vpop.eup %990  ;;  %770 = vmatpush.msrb.mxu1 %v736_v30  ;;  %v518_v14 = vmul.f32 0.5, %v502_v55  ;;  %v497_v63 = vadd.f32 1.0, %v989_v40  ;;  %v747_v3 = vadd.f32 %v731_v19, %v1395_v38  ;;  %v669_v56 = vmul.f32 0.5, %v653_v46 }
 0x1cc   :  { %v993_v15 = vpop.eup %992  ;;  %v700_v43 = vsub.f32 %v684_v26, %v524_v52  ;;  %v498_v51 = vadd.f32 1.0, %v991_v8  ;;  %v670_v62 = vmul.f32 0.5, %v654_v49  ;;  %v689_v0 = vmul.f32 %v673_v20, %v1348_v1 }
 0x1cd   :  { %v995_v41 = vpop.eup %994  ;;  %771 = vmatpush.msrb.mxu1 %v732_v10  ;;  %v534_v21 = vmul.f32 %v518_v14, %v1358_v12  ;;  %v513_v9 = vmul.f32 0.5, %v497_v63  ;;  %v493_v33 = vadd.f32 1.0, %v993_v15  ;;  %v690_v11 = vmul.f32 %v674_v17, %v1351_v5 }
 0x1ce   :  { %v717_v42 = vmul.f32 %v1457_v28, %v700_v43  ;;  %v514_v31 = vmul.f32 0.5, %v498_v51  ;;  %v494_v29 = vadd.f32 1.0, %v995_v41  ;;  %891 = vmatmul.msk.f32.vlgmr.msrb.gmra.mxu1 %vm753_vm9, %v1517_v48  ;;  %v685_v58 = vmul.f32 %v669_v56, %v1407_v27 }
 0x1cf   :  { %828 = vmatpush.msra.mxu1 %v747_v3  ;;  %v710_v13 = vsub.f32 %v694_v47, %v534_v21  ;;  %v529_v38 = vmul.f32 %v513_v9, %v1426_v4  ;;  %v509_v59 = vmul.f32 0.5, %v493_v33  ;;  %v686_v61 = vmul.f32 %v670_v62, %v1410_v37 }
 0x1d0   :  { %v733_v12 = vadd.f32 %v717_v42, %v524_v52  ;;  %v530_v60 = vmul.f32 %v514_v31, %v1433_v22  ;;  %v510_v34 = vmul.f32 0.5, %v494_v29 }
 0x1d1   :  { %v727_v24 = vmul.f32 %v1457_v28, %v710_v13  ;;  %v705_v23 = vsub.f32 %v689_v0, %v529_v38  ;;  %v525_v1 = vmul.f32 %v509_v59, %v1462_v44 }
 0x1d2   :  { %791 = vmatpush.msra.mxu2 %v733_v12  ;;  %v706_v4 = vsub.f32 %v690_v11, %v530_v60  ;;  %v526_v2 = vmul.f32 %v510_v34, %v1469_v35 }
 0x1d3   :  { %v743_v50 = vadd.f32 %v727_v24, %v534_v21  ;;  %v722_v5 = vmul.f32 %v1457_v28, %v705_v23  ;;  %v701_v25 = vsub.f32 %v685_v58, %v525_v1  ;;  %892 = vmatmul.msk.f32.vlgmr.msra.gmra.mxu2 %vm753_vm9, %v1517_v48 }
 0x1d4   :  { %v723_v27 = vmul.f32 %v1457_v28, %v706_v4  ;;  %v702_v22 = vsub.f32 %v686_v61, %v526_v2 }
 0x1d5   :  { %829 = vmatpush.msra.mxu1 %v743_v50  ;;  %v738_v32 = vadd.f32 %v722_v5, %v529_v38  ;;  %v718_v44 = vmul.f32 %v1457_v28, %v701_v25 }
 0x1d6   :  { %v739_v57 = vadd.f32 %v723_v27, %v530_v60  ;;  %v719_v37 = vmul.f32 %v1457_v28, %v702_v22 }
 0x1d7   :  { %810 = vmatpush.msra.mxu3 %v738_v32  ;;  %v734_v18 = vadd.f32 %v718_v44, %v525_v1 }
 0x1d8   :  { %830 = vmatpush.msra.mxu1 %v739_v57  ;;  %v735_v35 = vadd.f32 %v719_v37, %v526_v2 }
 0x1d9   :  { %811 = vmatpush.msra.mxu3 %v734_v18 }
 0x1da   :  { %831 = vmatpush.msra.mxu1 %v735_v35  ;;  %893 = vmatmul.msk.f32.vlgmr.msra.gmra.mxu3 %vm753_vm9, %v1517_v48 }
 0x1db   :  { %894 = vmatmul.msk.f32.vlgmr.msra.gmra.mxu1 %vm753_vm9, %v1517_v48 }
 0x239   :  { %v751_v6 = vpop.permute.xlu1 %750 }
 0x24b   :  { %v773_v7 = vpop.f32.mrf.mxu1 }
 0x24c   :  { %v774_v30 = vadd.f32 %v773_v7, %v751_v6 }
 0x256   :  { %v793_v39 = vpop.f32.mrf.mxu2 }
 0x257   :  { %v794_v26 = vadd.f32 %v793_v39, %v751_v6 }
 0x258   :  { %v833_v54 = vpop.f32.mrf.mxu1 }
 0x259   :  { %v834_v45 = vadd.f32 %v833_v54, %v751_v6 }
 0x25b   :  { %v839_v16 = vrot.slane %v834_v45, 4 }
 0x25d   :  { %v813_v28 = vpop.f32.mrf.mxu3  ;;  %v843_v19 = vsel %vm182_vm7, %v794_v26, %v839_v16 }
 0x25e   :  { %v814_v46 = vadd.f32 %v813_v28, %v751_v6  ;;  %845 = vst [vmem:[#allocation9 + $0x8] sm:$0xff] %v843_v19 }
 0x260   :  { %v838_v48 = vrot.slane %v814_v46, 4 }
 0x262   :  { %v842_v55 = vsel %vm182_vm7, %v774_v30, %v838_v48 }
 0x263   :  { %844 = vst [vmem:[#allocation9] sm:$0xff] %v842_v55 }
 0x264   :  { %856 = dma.vmem_to_hbm [thread:$0]  %s852_s7, 256, %s854_s10, [#allocation4]  }
 0x265   :  { %1086 = dma.done.wait [#allocation4], 256  }
 0x266   :  { %1087 = vsyncadd [#allocation4], 4294967040 }
 0x267   :  { %861 = vsyncpa [#allocation3], 1 }
 0x268   :  { %862 = vsyncpa [#allocation8], 1 }
 0x269   :  { %863 = vsyncpa [#allocation4], 1 }
 0x26a   :  { %864 = vsyncpa [#allocation5], 1 }

</bundles_post_ra>
